<compile_context>
chip_gen: v5e
topology: v5e:2x2
jax: 0.10.0
libtpu: 0.0.40
codegen_flags: <defaults>
</compile_context>

<pallas_src>
import jax
import jax.numpy as jnp
from jax.experimental import pallas as pl
from jax.experimental.pallas import tpu as pltpu


def _dropconnect_kernel(scale_ref, x_ref, o_ref):
    """One grid step == (B_TILE samples) x (one payload chunk).

    scale_ref : VMEM tile (B_TILE, 1), float32 per-sample scale (0 or 1/keep)
    x_ref     : VMEM tile (B_TILE, CHUNK)
    o_ref     : VMEM tile (B_TILE, CHUNK)
    """
    # Scale vector is tiny; cast once, then a single VPU multiply per element
    # (kept in the input dtype so no f32 copy of the tile is materialized).
    o_ref[...] = x_ref[...] * scale_ref[...].astype(x_ref.dtype)


def _round_up(x, m):
    return (x + m - 1) // m * m


def drop_connect(x, *, drop_rate=0.0, training=True, rng_key=None):
    """DropConnect forward. x: (N, C, H, W)."""
    if (not training) or drop_rate == 0.0:
        # PyTorch: eval -> identity; drop_rate=0 -> mask is always 1.
        return x

    if rng_key is None:
        rng_key = jax.random.PRNGKey(0)

    N, C, H, W = x.shape
    keep = 1.0 - float(drop_rate)

    # ---- per-sample scale (matches torch.floor(rand + keep) / keep) ----
    u = jax.random.uniform(rng_key, (N,), dtype=jnp.float32)
    mask = jnp.floor(u + keep)                      # {0, 1} per sample
    scale = (mask * (1.0 / keep)).astype(jnp.float32)

    # ---- lane-dense flatten + pad ----
    P = C * H * W
    # Payload chunk: multiple of 128 lanes, capped so one block stays small.
    lane_chunk = min(_round_up(P, 128), 16384)      # <= 64 KiB / sample-row (f32)
    P_pad = _round_up(P, lane_chunk)
    num_chunks = P_pad // lane_chunk

    # Batch tile: multiple of 8 sublanes (or the full batch if it is small).
    if N < 8:
        b_tile = N
        N_pad = N
    else:
        b_tile = 8
        N_pad = _round_up(N, 8)
    num_btiles = N_pad // b_tile

    xf = x.reshape(N, P)
    if (N_pad != N) or (P_pad != P):
        xf = jnp.pad(xf, ((0, N_pad - N), (0, P_pad - P)))
    scales = scale.reshape(N, 1)
    if N_pad != N:
        scales = jnp.pad(scales, ((0, N_pad - N), (0, 0)))

    out = pl.pallas_call(
        _dropconnect_kernel,
        out_shape=jax.ShapeDtypeStruct((N_pad, P_pad), x.dtype),
        grid_spec=pltpu.PrefetchScalarGridSpec(
            num_scalar_prefetch=0,
            grid=(num_btiles, num_chunks),
            in_specs=[
                pl.BlockSpec((b_tile, 1), lambda i, j: (i, 0)),          # scales
                pl.BlockSpec((b_tile, lane_chunk), lambda i, j: (i, j)),  # x
            ],
            out_specs=pl.BlockSpec((b_tile, lane_chunk), lambda i, j: (i, j)),
        ),
        compiler_params=pltpu.CompilerParams(
            # Pure elementwise, no cross-step state -> fully parallel grid
            # (lets v7x shard the batch axis across both TensorCores).
            dimension_semantics=("parallel", "parallel"),
        ),
    )(scales, xf)

    return out[:N, :P].reshape(N, C, H, W)


if __name__ == "__main__":
    key = jax.random.PRNGKey(0)
    xkey, mkey = jax.random.split(key)
    x = jax.random.normal(xkey, (2, 4, 16, 16), dtype=jnp.float32)

    drop_rate = 0.2
    out = drop_connect(x, drop_rate=drop_rate, training=True, rng_key=mkey)
    out = jax.block_until_ready(out)

    # Sanity check: every sample is either all-zero or x / keep_prob.
    keep = 1.0 - drop_rate
    ok = True
    for n in range(x.shape[0]):
        o_n = out[n]
        is_zero = bool(jnp.allclose(o_n, 0.0))
        is_scaled = bool(jnp.allclose(o_n, x[n] / keep, rtol=1e-5, atol=1e-5))
        ok = ok and (is_zero or is_scaled)

    # Eval mode must be the identity.
    out_eval = jax.block_until_ready(
        drop_connect(x, drop_rate=drop_rate, training=False)
    )
    ok = ok and bool(jnp.allclose(out_eval, x))

    assert ok, "DropConnect kernel output mismatch"
    print("KERNEL_OK")
</pallas_src>

<mosaic_0001>
module attributes {stable_mosaic.version = 11 : i64} {
  func.func @_dropconnect_kernel(%arg0: i32, %arg1: i32, %arg2: memref<2x1xf32, #tpu.memory_space<vmem>>, %arg3: memref<2x1024xf32, #tpu.memory_space<vmem>>, %arg4: memref<2x1024xf32, #tpu.memory_space<vmem>>) attributes {dimension_semantics = [#tpu.dimension_semantics<parallel>, #tpu.dimension_semantics<parallel>], iteration_bounds = array<i64: 1, 1>, scalar_prefetch = 0 : i64, scratch_operands = 0 : i64, tpu.core_type = #tpu.core_type<tc>, window_params = [{transform_indices = @transform_0, window_bounds = array<i64: 2, 1>}, {transform_indices = @transform_1, window_bounds = array<i64: 2, 1024>}, {transform_indices = @transform_2, window_bounds = array<i64: 2, 1024>}]} {
    %c0 = arith.constant 0 : index
    %c0_0 = arith.constant 0 : index
    %0 = vector.load %arg3[%c0, %c0_0] : memref<2x1024xf32, #tpu.memory_space<vmem>>, vector<2x1024xf32>
    %c0_1 = arith.constant 0 : index
    %c0_2 = arith.constant 0 : index
    %1 = vector.load %arg2[%c0_1, %c0_2] : memref<2x1xf32, #tpu.memory_space<vmem>>, vector<2x1xf32>
    %2 = vector.broadcast %1 : vector<2x1xf32> to vector<2x1024xf32>
    %3 = arith.mulf %0, %2 : vector<2x1024xf32>
    %c0_3 = arith.constant 0 : index
    %c0_4 = arith.constant 0 : index
    %4 = vector.load %arg4[%c0_3, %c0_4] : memref<2x1024xf32, #tpu.memory_space<vmem>>, vector<2x1024xf32>
    tpu.vector_store %arg4[%c0_3, %c0_4], %3 {strides = array<i32>} : memref<2x1024xf32, #tpu.memory_space<vmem>>, vector<2x1024xf32>,
    return
  }
  func.func @transform_0(%arg0: i32, %arg1: i32) -> (i32, i32) {
    %c0_i32 = arith.constant 0 : i32
    %c0_i32_0 = arith.constant 0 : i32
    return %arg0, %c0_i32 : i32, i32
  }
  func.func @transform_1(%arg0: i32, %arg1: i32) -> (i32, i32) {
    %c0_i32 = arith.constant 0 : i32
    return %arg0, %arg1 : i32, i32
  }
  func.func @transform_2(%arg0: i32, %arg1: i32) -> (i32, i32) {
    %c0_i32 = arith.constant 0 : i32
    return %arg0, %arg1 : i32, i32
  }
}

</mosaic_0001>

<bundles_post_ra>
// kernel: tpu_custom_call.1
= control target key start
LH: loop header
LB: loop body
LE: loop exit
PB: predicated region body
PF: predicated region fallthrough
CT: control target
= control target key end

     0   :  { %7 = vsyncpa [#allocation3], 0  ;;  %s144_s0 = inlined_call_operand.vmem [shape: f32[2,1], index: 0, kind: input, shape index: {}]   ;;  %s145_s1 = inlined_call_operand.hbm [shape: f32[2,1024], index: 1, kind: input, shape index: {}]   ;;  %s146_s2 = inlined_call_operand.hbm [shape: f32[2,1024], index: 2, kind: output, shape index: {}]  }
   0x1   :  { %8 = vsyncpa [#allocation4], 0  ;;  %s16_s11 = sshll.u32 %s145_s1, 4  ;;  %s116_s12 = smov [#allocation2]   ;;  %s17_s11 = int_to_ptr.hbm [resolvable:$true] %s16_s11 }
   0x2   :  { %s18_s13 = sshll.u32 %s116_s12, 4  ;;  %s19_s13 = int_to_ptr.vmem [resolvable:$true] %s18_s13 }
   0x3   :  { %21 = dma.hbm_to_vmem [thread:$0]  %s17_s11, 256, %s19_s13, [#allocation3]  }
   0x4   :  { %112 = dma.done.wait [#allocation3], 256  }
   0x5   :  { %113 = vsyncadd [#allocation3], 4294967040  ;;  %v117_v0 = vmov 0   ;;  %v28_v1 = vld [vmem:[%s144_s0] sm:$0x3]  ;;  %v27_v7 = vld [vmem:[#allocation2 + $0x8] sm:$0xff] }
   0x6   :  { %63 = vset.pattern.permute.xlu0 %v117_v0  ;;  %v118_v2 = vmov 269488144   ;;  %v26_v6 = vld [vmem:[#allocation2] sm:$0xff]  ;;  %s119_s1 = smov [#allocation5]   ;;  %s49_s19 = sshll.u32 %s146_s2, 4  ;;  %s50_s19 = int_to_ptr.hbm [resolvable:$true] %s49_s19 }
   0x7   :  { %31 = vperm.xlu0 %63, %v28_v1   ;;  %v34_v3 = vunpack.c.l.s4 %v118_v2  ;;  %s47_s16 = sshll.u32 %s119_s1, 4  ;;  %s48_s16 = int_to_ptr.vmem [resolvable:$true] %s47_s16 }
   0x9   :  { %v35_v4 = vunpack.c.0.s8 %v34_v3 }
  0x79   :  { %v32_v5 = vpop.permute.xlu0 %31 }
  0x7a   :  { %v36_v8 = vperm.slane %v32_v5, %v35_v4 }
  0x7c   :  { %v38_v9 = vmul.f32 %v36_v8, %v26_v6  ;;  %v39_v10 = vmul.f32 %v36_v8, %v27_v7 }
  0x7e   :  { %40 = vst [vmem:[#allocation5] sm:$0xff] %v38_v9 }
  0x7f   :  { %41 = vst [vmem:[#allocation5 + $0x8] sm:$0xff] %v39_v10 }
  0x80   :  { %52 = dma.vmem_to_hbm [thread:$0]  %s48_s16, 256, %s50_s19, [#allocation4]  }
  0x81   :  { %114 = dma.done.wait [#allocation4], 256  }
  0x82   :  { %115 = vsyncadd [#allocation4], 4294967040 }
  0x83   :  { %57 = vsyncpa [#allocation3], 1 }
  0x84   :  { %58 = vsyncpa [#allocation4], 1 }

</bundles_post_ra>
